<compile_context>
chip_gen: v6e
topology: v6e:2x2x1
jax: 0.10.0
libtpu: 0.0.40
codegen_flags: <defaults>
</compile_context>

<pallas_src>
import jax
import jax.numpy as jnp
from jax.experimental import pallas as pl
from jax.experimental.pallas import tpu as pltpu


def _permute_kernel(x_ref, o_ref):
    # x_ref: (1, C, TB, HW)   o_ref: (1, TB, C, HW)
    tb = x_ref.shape[2]
    # Static unrolled loop: each iteration stores one dense (C, HW) slab
    # (full-lane, unmasked store) into the output; the strided access is on the
    # read side, which is cheaper than a strided/masked store.
    for t in range(tb):
        o_ref[0, t, :, :] = x_ref[0, :, t, :]


def permute_02134(x, *, t_block=None):
    """Pallas TPU implementation of x.permute(0, 2, 1, 3, 4) for NCDHW input."""
    N, C, T, H, W = x.shape
    HW = H * W

    if t_block is None:
        # Whole T per grid step; at demo sizes the (C, T, H*W) slab is ~32 KiB,
        # far below VMEM on every generation (incl. v7x's 64 MiB).
        t_block = T
    assert T % t_block == 0
    # Mosaic block constraint: second-minor block dim must be a multiple of 8
    # or span the full axis.
    assert t_block == T or t_block % 8 == 0

    # Merge H*W so the lane (last) dim is dense; contiguous reshape, no copy.
    x4 = x.reshape(N, C, T, HW)

    out4 = pl.pallas_call(
        _permute_kernel,
        out_shape=jax.ShapeDtypeStruct((N, T, C, HW), x.dtype),
        grid=(N, T // t_block),
        in_specs=[
            pl.BlockSpec((1, C, t_block, HW), lambda n, ti: (n, 0, ti, 0)),
        ],
        out_specs=pl.BlockSpec((1, t_block, C, HW), lambda n, ti: (n, ti, 0, 0)),
        compiler_params=pltpu.CompilerParams(
            dimension_semantics=("parallel", "parallel")),
    )(x4)

    return out4.reshape(N, T, C, H, W)


if __name__ == "__main__":
    key = jax.random.PRNGKey(0)

    # NCDHW, matching the S3D-G usage of Permute: (N, C, T, H, W)
    N, C, T, H, W = 2, 4, 8, 16, 16
    x = jax.random.normal(key, (N, C, T, H, W), jnp.float32)

    out = jax.jit(permute_02134)(x)
    out = jax.block_until_ready(out)

    ref = jnp.transpose(x, (0, 2, 1, 3, 4))
    assert out.shape == (N, T, C, H, W), out.shape
    assert bool(jnp.array_equal(out, ref))
    print("KERNEL_OK")
</pallas_src>

<mosaic_0001>
module attributes {stable_mosaic.version = 11 : i64} {
  func.func @_permute_kernel(%arg0: i32, %arg1: i32, %arg2: memref<1x4x8x256xf32, #tpu.memory_space<vmem>>, %arg3: memref<1x8x4x256xf32, #tpu.memory_space<vmem>>) attributes {dimension_semantics = [#tpu.dimension_semantics<parallel>, #tpu.dimension_semantics<parallel>], iteration_bounds = array<i64: 2, 1>, scalar_prefetch = 0 : i64, scratch_operands = 0 : i64, tpu.core_type = #tpu.core_type<tc>, window_params = [{transform_indices = @transform_0, window_bounds = array<i64: 1, 4, 8, 256>}, {transform_indices = @transform_1, window_bounds = array<i64: 1, 8, 4, 256>}]} {
    %c0 = arith.constant 0 : index
    %c0_0 = arith.constant 0 : index
    %c0_1 = arith.constant 0 : index
    %c0_2 = arith.constant 0 : index
    %0 = vector.load %arg2[%c0, %c0_0, %c0_1, %c0_2] : memref<1x4x8x256xf32, #tpu.memory_space<vmem>>, vector<1x4x1x256xf32>
    %1 = vector.shape_cast %0 : vector<1x4x1x256xf32> to vector<4x256xf32>
    %c0_3 = arith.constant 0 : index
    %c0_4 = arith.constant 0 : index
    %c0_5 = arith.constant 0 : index
    %c0_6 = arith.constant 0 : index
    %2 = vector.load %arg3[%c0_3, %c0_4, %c0_5, %c0_6] : memref<1x8x4x256xf32, #tpu.memory_space<vmem>>, vector<1x1x4x256xf32>
    %3 = vector.shape_cast %2 : vector<1x1x4x256xf32> to vector<4x256xf32>
    %4 = vector.shape_cast %1 : vector<4x256xf32> to vector<1x1x4x256xf32>
    tpu.vector_store %arg3[%c0_3, %c0_4, %c0_5, %c0_6], %4 {strides = array<i32>} : memref<1x8x4x256xf32, #tpu.memory_space<vmem>>, vector<1x1x4x256xf32>,
    %c0_7 = arith.constant 0 : index
    %c0_8 = arith.constant 0 : index
    %c1 = arith.constant 1 : index
    %c0_9 = arith.constant 0 : index
    %5 = vector.load %arg2[%c0_7, %c0_8, %c1, %c0_9] : memref<1x4x8x256xf32, #tpu.memory_space<vmem>>, vector<1x4x1x256xf32>
    %6 = vector.shape_cast %5 : vector<1x4x1x256xf32> to vector<4x256xf32>
    %c0_10 = arith.constant 0 : index
    %c1_11 = arith.constant 1 : index
    %c0_12 = arith.constant 0 : index
    %c0_13 = arith.constant 0 : index
    %7 = vector.load %arg3[%c0_10, %c1_11, %c0_12, %c0_13] : memref<1x8x4x256xf32, #tpu.memory_space<vmem>>, vector<1x1x4x256xf32>
    %8 = vector.shape_cast %7 : vector<1x1x4x256xf32> to vector<4x256xf32>
    %9 = vector.shape_cast %6 : vector<4x256xf32> to vector<1x1x4x256xf32>
    tpu.vector_store %arg3[%c0_10, %c1_11, %c0_12, %c0_13], %9 {strides = array<i32>} : memref<1x8x4x256xf32, #tpu.memory_space<vmem>>, vector<1x1x4x256xf32>,
    %c0_14 = arith.constant 0 : index
    %c0_15 = arith.constant 0 : index
    %c2 = arith.constant 2 : index
    %c0_16 = arith.constant 0 : index
    %10 = vector.load %arg2[%c0_14, %c0_15, %c2, %c0_16] : memref<1x4x8x256xf32, #tpu.memory_space<vmem>>, vector<1x4x1x256xf32>
    %11 = vector.shape_cast %10 : vector<1x4x1x256xf32> to vector<4x256xf32>
    %c0_17 = arith.constant 0 : index
    %c2_18 = arith.constant 2 : index
    %c0_19 = arith.constant 0 : index
    %c0_20 = arith.constant 0 : index
    %12 = vector.load %arg3[%c0_17, %c2_18, %c0_19, %c0_20] : memref<1x8x4x256xf32, #tpu.memory_space<vmem>>, vector<1x1x4x256xf32>
    %13 = vector.shape_cast %12 : vector<1x1x4x256xf32> to vector<4x256xf32>
    %14 = vector.shape_cast %11 : vector<4x256xf32> to vector<1x1x4x256xf32>
    tpu.vector_store %arg3[%c0_17, %c2_18, %c0_19, %c0_20], %14 {strides = array<i32>} : memref<1x8x4x256xf32, #tpu.memory_space<vmem>>, vector<1x1x4x256xf32>,
    %c0_21 = arith.constant 0 : index
    %c0_22 = arith.constant 0 : index
    %c3 = arith.constant 3 : index
    %c0_23 = arith.constant 0 : index
    %15 = vector.load %arg2[%c0_21, %c0_22, %c3, %c0_23] : memref<1x4x8x256xf32, #tpu.memory_space<vmem>>, vector<1x4x1x256xf32>
    %16 = vector.shape_cast %15 : vector<1x4x1x256xf32> to vector<4x256xf32>
    %c0_24 = arith.constant 0 : index
    %c3_25 = arith.constant 3 : index
    %c0_26 = arith.constant 0 : index
    %c0_27 = arith.constant 0 : index
    %17 = vector.load %arg3[%c0_24, %c3_25, %c0_26, %c0_27] : memref<1x8x4x256xf32, #tpu.memory_space<vmem>>, vector<1x1x4x256xf32>
    %18 = vector.shape_cast %17 : vector<1x1x4x256xf32> to vector<4x256xf32>
    %19 = vector.shape_cast %16 : vector<4x256xf32> to vector<1x1x4x256xf32>
    tpu.vector_store %arg3[%c0_24, %c3_25, %c0_26, %c0_27], %19 {strides = array<i32>} : memref<1x8x4x256xf32, #tpu.memory_space<vmem>>, vector<1x1x4x256xf32>,
    %c0_28 = arith.constant 0 : index
    %c0_29 = arith.constant 0 : index
    %c4 = arith.constant 4 : index
    %c0_30 = arith.constant 0 : index
    %20 = vector.load %arg2[%c0_28, %c0_29, %c4, %c0_30] : memref<1x4x8x256xf32, #tpu.memory_space<vmem>>, vector<1x4x1x256xf32>
    %21 = vector.shape_cast %20 : vector<1x4x1x256xf32> to vector<4x256xf32>
    %c0_31 = arith.constant 0 : index
    %c4_32 = arith.constant 4 : index
    %c0_33 = arith.constant 0 : index
    %c0_34 = arith.constant 0 : index
    %22 = vector.load %arg3[%c0_31, %c4_32, %c0_33, %c0_34] : memref<1x8x4x256xf32, #tpu.memory_space<vmem>>, vector<1x1x4x256xf32>
    %23 = vector.shape_cast %22 : vector<1x1x4x256xf32> to vector<4x256xf32>
    %24 = vector.shape_cast %21 : vector<4x256xf32> to vector<1x1x4x256xf32>
    tpu.vector_store %arg3[%c0_31, %c4_32, %c0_33, %c0_34], %24 {strides = array<i32>} : memref<1x8x4x256xf32, #tpu.memory_space<vmem>>, vector<1x1x4x256xf32>,
    %c0_35 = arith.constant 0 : index
    %c0_36 = arith.constant 0 : index
    %c5 = arith.constant 5 : index
    %c0_37 = arith.constant 0 : index
    %25 = vector.load %arg2[%c0_35, %c0_36, %c5, %c0_37] : memref<1x4x8x256xf32, #tpu.memory_space<vmem>>, vector<1x4x1x256xf32>
    %26 = vector.shape_cast %25 : vector<1x4x1x256xf32> to vector<4x256xf32>
    %c0_38 = arith.constant 0 : index
    %c5_39 = arith.constant 5 : index
    %c0_40 = arith.constant 0 : index
    %c0_41 = arith.constant 0 : index
    %27 = vector.load %arg3[%c0_38, %c5_39, %c0_40, %c0_41] : memref<1x8x4x256xf32, #tpu.memory_space<vmem>>, vector<1x1x4x256xf32>
    %28 = vector.shape_cast %27 : vector<1x1x4x256xf32> to vector<4x256xf32>
    %29 = vector.shape_cast %26 : vector<4x256xf32> to vector<1x1x4x256xf32>
    tpu.vector_store %arg3[%c0_38, %c5_39, %c0_40, %c0_41], %29 {strides = array<i32>} : memref<1x8x4x256xf32, #tpu.memory_space<vmem>>, vector<1x1x4x256xf32>,
    %c0_42 = arith.constant 0 : index
    %c0_43 = arith.constant 0 : index
    %c6 = arith.constant 6 : index
    %c0_44 = arith.constant 0 : index
    %30 = vector.load %arg2[%c0_42, %c0_43, %c6, %c0_44] : memref<1x4x8x256xf32, #tpu.memory_space<vmem>>, vector<1x4x1x256xf32>
    %31 = vector.shape_cast %30 : vector<1x4x1x256xf32> to vector<4x256xf32>
    %c0_45 = arith.constant 0 : index
    %c6_46 = arith.constant 6 : index
    %c0_47 = arith.constant 0 : index
    %c0_48 = arith.constant 0 : index
    %32 = vector.load %arg3[%c0_45, %c6_46, %c0_47, %c0_48] : memref<1x8x4x256xf32, #tpu.memory_space<vmem>>, vector<1x1x4x256xf32>
    %33 = vector.shape_cast %32 : vector<1x1x4x256xf32> to vector<4x256xf32>
    %34 = vector.shape_cast %31 : vector<4x256xf32> to vector<1x1x4x256xf32>
    tpu.vector_store %arg3[%c0_45, %c6_46, %c0_47, %c0_48], %34 {strides = array<i32>} : memref<1x8x4x256xf32, #tpu.memory_space<vmem>>, vector<1x1x4x256xf32>,
    %c0_49 = arith.constant 0 : index
    %c0_50 = arith.constant 0 : index
    %c7 = arith.constant 7 : index
    %c0_51 = arith.constant 0 : index
    %35 = vector.load %arg2[%c0_49, %c0_50, %c7, %c0_51] : memref<1x4x8x256xf32, #tpu.memory_space<vmem>>, vector<1x4x1x256xf32>
    %36 = vector.shape_cast %35 : vector<1x4x1x256xf32> to vector<4x256xf32>
    %c0_52 = arith.constant 0 : index
    %c7_53 = arith.constant 7 : index
    %c0_54 = arith.constant 0 : index
    %c0_55 = arith.constant 0 : index
    %37 = vector.load %arg3[%c0_52, %c7_53, %c0_54, %c0_55] : memref<1x8x4x256xf32, #tpu.memory_space<vmem>>, vector<1x1x4x256xf32>
    %38 = vector.shape_cast %37 : vector<1x1x4x256xf32> to vector<4x256xf32>
    %39 = vector.shape_cast %36 : vector<4x256xf32> to vector<1x1x4x256xf32>
    tpu.vector_store %arg3[%c0_52, %c7_53, %c0_54, %c0_55], %39 {strides = array<i32>} : memref<1x8x4x256xf32, #tpu.memory_space<vmem>>, vector<1x1x4x256xf32>,
    return
  }
  func.func @transform_0(%arg0: i32, %arg1: i32) -> (i32, i32, i32, i32) {
    %c0_i32 = arith.constant 0 : i32
    %c0_i32_0 = arith.constant 0 : i32
    %c0_i32_1 = arith.constant 0 : i32
    return %arg0, %c0_i32, %arg1, %c0_i32_0 : i32, i32, i32, i32
  }
  func.func @transform_1(%arg0: i32, %arg1: i32) -> (i32, i32, i32, i32) {
    %c0_i32 = arith.constant 0 : i32
    %c0_i32_0 = arith.constant 0 : i32
    %c0_i32_1 = arith.constant 0 : i32
    return %arg0, %arg1, %c0_i32, %c0_i32_0 : i32, i32, i32, i32
  }
}

</mosaic_0001>

<bundles_post_ra>
// kernel: permute_02134.1
= control target key start
LH: loop header
LB: loop body
LE: loop exit
PB: predicated region body
PF: predicated region fallthrough
CT: control target
= control target key end

     0   :  { %s681_s6 = smov 0   ;;  %s683_s7 = smov 0   ;;  %s776_s0 = inlined_call_operand.vmem [shape: f32[2,4,8,256], index: 0, kind: input, shape index: {}]   ;;  %s777_s1 = inlined_call_operand.vmem [shape: f32[2,8,4,256], index: 1, kind: output, shape index: {}]  }
   0x1   :  { %s685_s8 = smov 0  }
   0x2 LB: > { %s23_s9 = sadd.s32 1, %s664_s7  ;;  %p566_p0 = scmp.ge.s32.totalorder %s668_s8, 1  ;;  %s668_s8 = sphi %s685_s8, %s11_s8   ;;  %s664_s7 = sphi %s683_s7, %s779_s7   ;;  %s660_s6 = sphi %s681_s6, %s778_s6  }
   0x3   : > { %p25_p1 = scmp.ge.s32.totalorder %s23_s9, 2  ;;  %p107_p2 = scmp.lt.s32.totalorder %s668_s8, 3 }
   0x5   : > { %s781_s9 = smov (%p25_p1, %s23_s9), 0  ;;  %p108_p3 = pnand %p566_p0, %p107_p2 }
   0x6   : > { %p136_p4 = scmp.lt.s32.totalorder (!%p108_p3), %s660_s6, 1 }
   0x7   : > { %111 = sbr.rel (%p108_p3) target bundleno = 40 (0x28), region = 24 }
   0xc   : > { %v172_v0 = vlaneseq  ;;  %v670_v1 = vmov 1935823168   ;;  %s783_s6 = smov (!%p136_p4, %s660_s6), 1 }
   0xd   : > { %v170_v2 = vunpack.c.l.s4 %v670_v1  ;;  %s612_s10 = sshll.u32 %s783_s6, 6 }
   0xe   : > { %v173_v3 = vshrl.u32 %v172_v0, 7  ;;  %s702_s13 = scalar_lea.vmem %s776_s0, %s612_s10  ;;  %s721_s16 = scalar_lea.vmem %s777_s1, %s612_s10 }
   0xf   : > { %v171_v4 = vunpack.c.0.s8 %v170_v2  ;;  %v156_v5 = vld [vmem:[%s702_s13] ss:$8 sm:$0x3]  ;;  %v571_v6 = vld [vmem:[%s702_s13 + $0x10] ss:$8 sm:$0x3] }
  0x10   : > { %v572_v8 = vld [vmem:[%s702_s13 + $0x20] ss:$8 sm:$0x3]  ;;  %v573_v9 = vld [vmem:[%s702_s13 + $0x30] ss:$8 sm:$0x3] }
  0x11   : > { %v706_v7 = vsub.s32 %v171_v4, %v173_v3  ;;  %v167_v10 = vcombine.low %v156_v5, %v572_v8  ;;  %v168_v11 = vcombine.low %v571_v6, %v573_v9  ;;  %v575_v12 = vld [vmem:[%s702_s13 + $0x1] ss:$8 sm:$0x3]  ;;  %v576_v13 = vld [vmem:[%s702_s13 + $0x11] ss:$8 sm:$0x3] }
  0x12   : > { %v577_v14 = vld [vmem:[%s702_s13 + $0x21] ss:$8 sm:$0x3]  ;;  %v578_v15 = vld [vmem:[%s702_s13 + $0x31] ss:$8 sm:$0x3] }
  0x13   : > { %v175_v16 = vrot.slane %v167_v10, %v706_v7  ;;  %v182_v17 = vrot.slane %v168_v11, %v706_v7  ;;  %v205_v18 = vcombine.low %v575_v12, %v577_v14  ;;  %v206_v19 = vcombine.low %v576_v13, %v578_v15  ;;  %v580_v20 = vld [vmem:[%s702_s13 + $0x2] ss:$8 sm:$0x3]  ;;  %v581_v21 = vld [vmem:[%s702_s13 + $0x12] ss:$8 sm:$0x3] }
  0x14   : > { %v582_v22 = vld [vmem:[%s702_s13 + $0x22] ss:$8 sm:$0x3]  ;;  %v583_v23 = vld [vmem:[%s702_s13 + $0x32] ss:$8 sm:$0x3] }
  0x15   : > { %v183_v24 = vcombine.low %v175_v16, %v182_v17  ;;  %v213_v25 = vrot.slane %v205_v18, %v706_v7  ;;  %v220_v26 = vrot.slane %v206_v19, %v706_v7  ;;  %v244_v27 = vcombine.low %v580_v20, %v582_v22  ;;  %v585_v28 = vld [vmem:[%s702_s13 + $0x3] ss:$8 sm:$0x3]  ;;  %v586_v29 = vld [vmem:[%s702_s13 + $0x13] ss:$8 sm:$0x3] }
  0x16   : > { %v245_v30 = vcombine.low %v581_v21, %v583_v23  ;;  %v587_v31 = vld [vmem:[%s702_s13 + $0x23] ss:$8 sm:$0x3]  ;;  %v588_v32 = vld [vmem:[%s702_s13 + $0x33] ss:$8 sm:$0x3] }
  0x17   : > { %574 = vst.sshfl [vmem:[%s721_s16] sm:$0xff pattern:$0x75316420] %v183_v24  ;;  %v221_v33 = vcombine.low %v213_v25, %v220_v26  ;;  %v252_v34 = vrot.slane %v244_v27, %v706_v7  ;;  %v283_v35 = vcombine.low %v585_v28, %v587_v31  ;;  %v284_v36 = vcombine.low %v586_v29, %v588_v32  ;;  %v590_v37 = vld [vmem:[%s702_s13 + $0x4] ss:$8 sm:$0x3] }
  0x18   : > { %v591_v38 = vld [vmem:[%s702_s13 + $0x14] ss:$8 sm:$0x3]  ;;  %v259_v39 = vrot.slane %v245_v30, %v706_v7  ;;  %v592_v40 = vld [vmem:[%s702_s13 + $0x24] ss:$8 sm:$0x3] }
  0x19   : > { %v593_v41 = vld [vmem:[%s702_s13 + $0x34] ss:$8 sm:$0x3]  ;;  %614 = vst.sshfl [vmem:[%s721_s16 + $0x8] sm:$0xff pattern:$0x75316420] %v221_v33  ;;  %v291_v42 = vrot.slane %v283_v35, %v706_v7  ;;  %v298_v43 = vrot.slane %v284_v36, %v706_v7  ;;  %v322_v44 = vcombine.low %v590_v37, %v592_v40 }
  0x1a   : > { %v323_v45 = vcombine.low %v591_v38, %v593_v41  ;;  %v595_v46 = vld [vmem:[%s702_s13 + $0x5] ss:$8 sm:$0x3]  ;;  %v596_v47 = vld [vmem:[%s702_s13 + $0x15] ss:$8 sm:$0x3]  ;;  %v260_v48 = vcombine.low %v252_v34, %v259_v39 }
  0x1b   : > { %v597_v49 = vld [vmem:[%s702_s13 + $0x25] ss:$8 sm:$0x3]  ;;  %v598_v50 = vld [vmem:[%s702_s13 + $0x35] ss:$8 sm:$0x3]  ;;  %v299_v51 = vcombine.low %v291_v42, %v298_v43  ;;  %v330_v52 = vrot.slane %v322_v44, %v706_v7 }
  0x1c   : > { %v337_v53 = vrot.slane %v323_v45, %v706_v7  ;;  %v361_v54 = vcombine.low %v595_v46, %v597_v49  ;;  %v600_v55 = vld [vmem:[%s702_s13 + $0x6] ss:$8 sm:$0x3]  ;;  %v601_v56 = vld [vmem:[%s702_s13 + $0x16] ss:$8 sm:$0x3]  ;;  %v362_v57 = vcombine.low %v596_v47, %v598_v50 }
  0x1d   : > { %615 = vst.sshfl [vmem:[%s721_s16 + $0x10] sm:$0xff pattern:$0x75316420] %v260_v48  ;;  %v602_v58 = vld [vmem:[%s702_s13 + $0x26] ss:$8 sm:$0x3] }
  0x1e   : > { %v603_v59 = vld [vmem:[%s702_s13 + $0x36] ss:$8 sm:$0x3]  ;;  %616 = vst.sshfl [vmem:[%s721_s16 + $0x18] sm:$0xff pattern:$0x75316420] %v299_v51  ;;  %v338_v60 = vcombine.low %v330_v52, %v337_v53  ;;  %v369_v61 = vrot.slane %v361_v54, %v706_v7  ;;  %v400_v62 = vcombine.low %v600_v55, %v602_v58  ;;  %v376_v2 = vrot.slane %v362_v57, %v706_v7 }
  0x1f   : > { %v401_v63 = vcombine.low %v601_v56, %v603_v59  ;;  %v605_v0 = vld [vmem:[%s702_s13 + $0x7] ss:$8 sm:$0x3]  ;;  %v606_v1 = vld [vmem:[%s702_s13 + $0x17] ss:$8 sm:$0x3] }
  0x20   : > { %v607_v3 = vld [vmem:[%s702_s13 + $0x27] ss:$8 sm:$0x3]  ;;  %v608_v4 = vld [vmem:[%s702_s13 + $0x37] ss:$8 sm:$0x3]  ;;  %v408_v5 = vrot.slane %v400_v62, %v706_v7  ;;  %v377_v10 = vcombine.low %v369_v61, %v376_v2 }
  0x21   : > { %617 = vst.sshfl [vmem:[%s721_s16 + $0x20] sm:$0xff pattern:$0x75316420] %v338_v60  ;;  %v415_v6 = vrot.slane %v401_v63, %v706_v7  ;;  %v439_v8 = vcombine.low %v605_v0, %v607_v3  ;;  %v440_v9 = vcombine.low %v606_v1, %v608_v4 }
  0x22   : > { %618 = vst.sshfl [vmem:[%s721_s16 + $0x28] sm:$0xff pattern:$0x75316420] %v377_v10 }
  0x23   : > { %v416_v11 = vcombine.low %v408_v5, %v415_v6  ;;  %v447_v12 = vrot.slane %v439_v8, %v706_v7  ;;  %v454_v13 = vrot.slane %v440_v9, %v706_v7 }
  0x25   : > { %619 = vst.sshfl [vmem:[%s721_s16 + $0x30] sm:$0xff pattern:$0x75316420] %v416_v11  ;;  %v455_v14 = vcombine.low %v447_v12, %v454_v13 }
  0x27   : > { %620 = vst.sshfl [vmem:[%s721_s16 + $0x38] sm:$0xff pattern:$0x75316420] %v455_v14 }
  0x28 PF: > { %s11_s8 = sadd.s32 1, %s668_s8   ;;  %s778_s6 = smov %s664_s7 }
  0x29   : > { %p8_p5 = scmp.ge.s32.totalorder %s11_s8, 4   ;;  %s779_s7 = smov %s781_s9 }
  0x2b   :  { %10 = sbr.rel (!%p8_p5) target bundleno = 2 (0x2), region = 92 }

</bundles_post_ra>
